<compile_context>
chip_gen: v7x
topology: tpu7x:2x2x1
jax: 0.10.0
libtpu: 0.0.40
codegen_flags: <defaults>
</compile_context>

<pallas_src>
import functools
import math

import jax
import jax.numpy as jnp
from jax import lax
from jax.experimental import pallas as pl
from jax.experimental.pallas import tpu as pltpu


def _pick_q_tile(seq_len: int) -> int:
    """Largest query tile (multiple of 8, capped at 512) that divides S, else full S."""
    for t in (512, 256, 128, 64, 32, 16, 8):
        if seq_len % t == 0:
            return t
    return seq_len


def _vmem_limit_bytes() -> int:
    """~75% of physical VMEM per core: ~48 MiB on v7x, ~96 MiB on v5e/v6e."""
    try:
        cap = int(pltpu.get_tpu_info().vmem_capacity_bytes)
    except Exception:
        cap = 64 * 1024 * 1024  # conservative fallback (v7x-sized)
    return min((cap * 3) // 4, 112 * 1024 * 1024)


def encoder_layer_kernel(
    x_ref,       # (1, S, D)   f32  full sequence for this batch element
    wq_t_ref,    # (D, D)      bf16 w_q^T
    wkv_t_ref,   # (D, 2D)     bf16 [w_k^T | w_v^T]
    wo_t_ref,    # (D, D)      bf16 w_o^T
    w1_t_ref,    # (D, F)      bf16
    w2_t_ref,    # (F, D)      bf16
    vec_ref,     # (8, max(D,F)) f32  [b1; b2; g1; be1; g2; be2; 0; 0]
    o_ref,       # (1, TQ, D)
    kv_scratch,  # (S, 2D) bf16 — persistent K|V for the current batch element
    *,
    num_heads: int,
):
    S = x_ref.shape[1]
    D = x_ref.shape[2]
    TQ = o_ref.shape[1]
    F = w1_t_ref.shape[1]
    H = num_heads
    dk = D // H
    scale = 1.0 / math.sqrt(dk)
    eps = 1e-5

    s_idx = pl.program_id(1)

    # ---- K|V projection for the whole sequence, once per batch element ----
    # (grid axis 1 is "arbitrary": kv_scratch carries K/V across query tiles)
    @pl.when(s_idx == 0)
    def _():
        xf = x_ref[0].astype(jnp.bfloat16)                               # (S, D)
        kv = jnp.dot(xf, wkv_t_ref[...],
                     preferred_element_type=jnp.float32)                 # (S, 2D) f32 acc
        kv_scratch[...] = kv.astype(jnp.bfloat16)

    # ---- packed parameter vectors: static sub-slices of one resident slab ----
    b1 = vec_ref[0:1, 0:F]
    b2 = vec_ref[1:2, 0:D]
    g1 = vec_ref[2:3, 0:D]
    be1 = vec_ref[3:4, 0:D]
    g2 = vec_ref[4:5, 0:D]
    be2 = vec_ref[5:6, 0:D]

    # ---- query-tile rows sliced from the single x stream (residual input) ----
    row0 = pl.multiple_of(s_idx * TQ, TQ)
    x_q = x_ref[0, pl.ds(row0, TQ), :].astype(jnp.float32)               # (TQ, D)

    # ---- Q projection for this tile only (bf16 operands, f32 accumulation) ----
    q = jnp.dot(x_q.astype(jnp.bfloat16), wq_t_ref[...],
                preferred_element_type=jnp.float32)                      # (TQ, D)
    q = q.astype(jnp.bfloat16)

    # ---- per-head scaled dot-product attention ----
    # Statically unrolled: static lane offsets (no dynamic lane slicing), H is small,
    # and each head's (TQ,S) scores die at its (TQ,dk) output.
    head_outs = []
    for h in range(H):
        lo, hi = h * dk, (h + 1) * dk
        qh = q[:, lo:hi]                                                 # (TQ, dk) bf16
        kh = kv_scratch[:, lo:hi]                                        # (S,  dk) bf16
        vh = kv_scratch[:, D + lo:D + hi]                                # (S,  dk) bf16
        scores = lax.dot_general(
            qh, kh, (((1,), (1,)), ((), ())),
            preferred_element_type=jnp.float32) * scale                  # (TQ, S) f32
        m = jnp.max(scores, axis=-1, keepdims=True)
        p = jnp.exp(scores - m)
        denom = jnp.sum(p, axis=-1, keepdims=True)
        p = p * pl.reciprocal(denom, approx=True)                        # EUP, not VALU divide
        head_outs.append(jnp.dot(p.astype(jnp.bfloat16), vh,
                                 preferred_element_type=jnp.float32))    # (TQ, dk) f32

    # ---- single output projection over the concatenated heads ----
    attn_cat = jnp.concatenate(head_outs, axis=-1)                       # (TQ, D) f32
    attn = jnp.dot(attn_cat.astype(jnp.bfloat16), wo_t_ref[...],
                   preferred_element_type=jnp.float32)                   # (TQ, D)

    # ---- residual + LayerNorm 1 (f32 elementwise) ----
    h1 = x_q + attn
    mu1 = jnp.mean(h1, axis=-1, keepdims=True)
    var1 = jnp.mean((h1 - mu1) * (h1 - mu1), axis=-1, keepdims=True)
    ln1 = (h1 - mu1) * lax.rsqrt(var1 + eps) * g1 + be1                  # (TQ, D)

    # ---- feed forward: linear2(relu(linear1(x))), dropout = identity ----
    ff = jnp.dot(ln1.astype(jnp.bfloat16), w1_t_ref[...],
                 preferred_element_type=jnp.float32) + b1                # (TQ, F)
    ff = jnp.maximum(ff, 0.0)
    ff = jnp.dot(ff.astype(jnp.bfloat16), w2_t_ref[...],
                 preferred_element_type=jnp.float32) + b2                # (TQ, D)

    # ---- residual + LayerNorm 2 ----
    h2 = ln1 + ff
    mu2 = jnp.mean(h2, axis=-1, keepdims=True)
    var2 = jnp.mean((h2 - mu2) * (h2 - mu2), axis=-1, keepdims=True)
    ln2 = (h2 - mu2) * lax.rsqrt(var2 + eps) * g2 + be2

    o_ref[0] = ln2.astype(o_ref.dtype)


def encoder_layer(x, params, num_heads):
    B, S, D = x.shape
    F = params["w1"].shape[0]
    TQ = _pick_q_tile(S)
    nQ = S // TQ
    P = max(D, F)

    cdt = jnp.bfloat16  # matmul operand dtype (MXU-native); accumulation stays f32

    # glue: pre-transpose / pre-fuse / pre-cast Linear weights.
    wq_t = params["wq"].T.astype(cdt)                                         # (D, D)
    wkv_t = jnp.concatenate([params["wk"].T, params["wv"].T], axis=1).astype(cdt)  # (D, 2D)
    wo_t = params["wo"].T.astype(cdt)                                         # (D, D)
    w1_t = params["w1"].T.astype(cdt)                                         # (D, F)
    w2_t = params["w2"].T.astype(cdt)                                         # (F, D)

    # pack biases / LayerNorm params into one slab (one stream instead of six)
    vec_slab = jnp.zeros((8, P), jnp.float32)
    vec_slab = vec_slab.at[0, :F].set(params["b1"].astype(jnp.float32))
    vec_slab = vec_slab.at[1, :D].set(params["b2"].astype(jnp.float32))
    vec_slab = vec_slab.at[2, :D].set(params["g1"].astype(jnp.float32))
    vec_slab = vec_slab.at[3, :D].set(params["be1"].astype(jnp.float32))
    vec_slab = vec_slab.at[4, :D].set(params["g2"].astype(jnp.float32))
    vec_slab = vec_slab.at[5, :D].set(params["be2"].astype(jnp.float32))

    def const(shape):
        # constant-index blocks: single-buffered (don't duplicate resident weights)
        return pl.BlockSpec(shape, lambda b, s: (0,) * len(shape),
                            pipeline_mode=pl.Buffered(1))

    return pl.pallas_call(
        functools.partial(encoder_layer_kernel, num_heads=num_heads),
        out_shape=jax.ShapeDtypeStruct((B, S, D), x.dtype),
        grid_spec=pltpu.PrefetchScalarGridSpec(
            num_scalar_prefetch=0,
            grid=(B, nQ),
            in_specs=[
                pl.BlockSpec((1, S, D), lambda b, s: (b, 0, 0)),   # x (full seq per batch)
                const((D, D)),        # wq^T
                const((D, 2 * D)),    # [wk^T | wv^T]
                const((D, D)),        # wo^T
                const((D, F)),        # w1^T
                const((F, D)),        # w2^T
                const((8, P)),        # packed b1/b2/g1/be1/g2/be2
            ],
            out_specs=pl.BlockSpec((1, TQ, D), lambda b, s: (b, s, 0)),
            scratch_shapes=[
                pltpu.VMEM((S, 2 * D), jnp.bfloat16),   # persistent K|V projections
            ],
        ),
        compiler_params=pltpu.CompilerParams(
            dimension_semantics=("parallel", "arbitrary"),
            vmem_limit_bytes=_vmem_limit_bytes(),
        ),
    )(x, wq_t, wkv_t, wo_t, w1_t, w2_t, vec_slab)


def encoder_layer_ref(x, params, num_heads):
    """Pure-JAX f32 reference mirroring the PyTorch forward (dropout=identity, mask=None)."""
    B, S, D = x.shape
    dk = D // num_heads
    eps = 1e-5

    def ln(h, g, b):
        mu = jnp.mean(h, axis=-1, keepdims=True)
        var = jnp.mean((h - mu) ** 2, axis=-1, keepdims=True)
        return (h - mu) / jnp.sqrt(var + eps) * g + b

    q = x @ params["wq"].T
    k = x @ params["wk"].T
    v = x @ params["wv"].T
    q = q.reshape(B, S, num_heads, dk).transpose(0, 2, 1, 3)
    k = k.reshape(B, S, num_heads, dk).transpose(0, 2, 1, 3)
    v = v.reshape(B, S, num_heads, dk).transpose(0, 2, 1, 3)
    scores = jnp.einsum("bhqd,bhkd->bhqk", q, k) / math.sqrt(dk)
    p = jax.nn.softmax(scores, axis=-1)
    o = jnp.einsum("bhqk,bhkd->bhqd", p, v)
    o = o.transpose(0, 2, 1, 3).reshape(B, S, D) @ params["wo"].T
    x1 = ln(x + o, params["g1"], params["be1"])
    ff = jnp.maximum(x1 @ params["w1"].T + params["b1"], 0.0) @ params["w2"].T + params["b2"]
    return ln(x1 + ff, params["g2"], params["be2"])


if __name__ == "__main__":
    B, S, D, H, F = 2, 8, 32, 4, 64

    key = jax.random.PRNGKey(0)
    ks = jax.random.split(key, 10)
    scale = 1.0 / math.sqrt(D)
    params = {
        "wq": jax.random.uniform(ks[0], (D, D), jnp.float32, -scale, scale),
        "wk": jax.random.uniform(ks[1], (D, D), jnp.float32, -scale, scale),
        "wv": jax.random.uniform(ks[2], (D, D), jnp.float32, -scale, scale),
        "wo": jax.random.uniform(ks[3], (D, D), jnp.float32, -scale, scale),
        "w1": jax.random.uniform(ks[4], (F, D), jnp.float32, -scale, scale),
        "b1": jax.random.uniform(ks[5], (F,), jnp.float32, -scale, scale),
        "w2": jax.random.uniform(ks[6], (D, F), jnp.float32, -1.0 / math.sqrt(F), 1.0 / math.sqrt(F)),
        "b2": jax.random.uniform(ks[7], (D,), jnp.float32, -1.0 / math.sqrt(F), 1.0 / math.sqrt(F)),
        "g1": jnp.ones((D,), jnp.float32),
        "be1": jnp.zeros((D,), jnp.float32),
        "g2": jnp.ones((D,), jnp.float32),
        "be2": jnp.zeros((D,), jnp.float32),
    }

    x = jax.random.normal(ks[8], (B, S, D), jnp.float32)

    out = jax.block_until_ready(encoder_layer(x, params, H))

    ref = encoder_layer_ref(x, params, H)
    assert out.shape == (B, S, D)
    # tolerance accounts for bf16 matmul operands (f32 accumulation) and the
    # EUP approx-reciprocal softmax normalization; reference is pure f32.
    max_err = float(jnp.max(jnp.abs(out - ref)))
    assert jnp.allclose(out, ref, atol=5e-2, rtol=5e-2), (
        f"mismatch vs JAX reference (max abs err {max_err})")

    print("KERNEL_OK")
</pallas_src>

<mosaic_0001>
module attributes {stable_mosaic.version = 11 : i64} {
  func.func @encoder_layer_kernel(%arg0: i32, %arg1: i32, %arg2: memref<1x8x32xf32, #tpu.memory_space<vmem>>, %arg3: memref<32x32xbf16, #tpu.memory_space<vmem>>, %arg4: memref<32x64xbf16, #tpu.memory_space<vmem>>, %arg5: memref<32x32xbf16, #tpu.memory_space<vmem>>, %arg6: memref<32x64xbf16, #tpu.memory_space<vmem>>, %arg7: memref<64x32xbf16, #tpu.memory_space<vmem>>, %arg8: memref<8x64xf32, #tpu.memory_space<vmem>>, %arg9: memref<1x8x32xf32, #tpu.memory_space<vmem>>, %arg10: memref<8x64xbf16, #tpu.memory_space<vmem>>) attributes {dimension_semantics = [#tpu.dimension_semantics<parallel>, #tpu.dimension_semantics<arbitrary>], iteration_bounds = array<i64: 2, 1>, scalar_prefetch = 0 : i64, scratch_operands = 1 : i64, tpu.core_type = #tpu.core_type<tc>, window_params = [{transform_indices = @transform_0, window_bounds = array<i64: 1, 8, 32>}, {pipeline_mode = #tpu.pipeline_mode<synchronous>, transform_indices = @transform_1, window_bounds = array<i64: 32, 32>}, {pipeline_mode = #tpu.pipeline_mode<synchronous>, transform_indices = @transform_2, window_bounds = array<i64: 32, 64>}, {pipeline_mode = #tpu.pipeline_mode<synchronous>, transform_indices = @transform_3, window_bounds = array<i64: 32, 32>}, {pipeline_mode = #tpu.pipeline_mode<synchronous>, transform_indices = @transform_4, window_bounds = array<i64: 32, 64>}, {pipeline_mode = #tpu.pipeline_mode<synchronous>, transform_indices = @transform_5, window_bounds = array<i64: 64, 32>}, {pipeline_mode = #tpu.pipeline_mode<synchronous>, transform_indices = @transform_6, window_bounds = array<i64: 8, 64>}, {transform_indices = @transform_7, window_bounds = array<i64: 1, 8, 32>}]} {
    %c0_i32 = arith.constant 0 : i32
    %0 = arith.cmpi eq, %arg1, %c0_i32 : i32
    %1 = arith.extui %0 : i1 to i32
    %c0_i32_0 = arith.constant 0 : i32
    %2 = arith.cmpi ne, %1, %c0_i32_0 : i32
    scf.if %2 {
      %c0_63 = arith.constant 0 : index
      %c0_64 = arith.constant 0 : index
      %c0_65 = arith.constant 0 : index
      %159 = vector.load %arg2[%c0_63, %c0_64, %c0_65] : memref<1x8x32xf32, #tpu.memory_space<vmem>>, vector<1x8x32xf32>
      %160 = vector.shape_cast %159 : vector<1x8x32xf32> to vector<8x32xf32>
      %161 = arith.truncf %160 : vector<8x32xf32> to vector<8x32xbf16>
      %c0_66 = arith.constant 0 : index
      %c0_67 = arith.constant 0 : index
      %162 = vector.load %arg4[%c0_66, %c0_67] : memref<32x64xbf16, #tpu.memory_space<vmem>>, vector<32x64xbf16>
      %cst_68 = arith.constant dense<0.000000e+00> : vector<8x64xf32>
      %163 = tpu.matmul %161, %162, %cst_68 {dimension_numbers = #tpu.dot_dimension_numbers<[1], [0], [0], [1], [0, 0, 1, 1], [], []>} : vector<8x32xbf16>, vector<32x64xbf16>, vector<8x64xf32> -> vector<8x64xf32>
      %164 = arith.truncf %163 : vector<8x64xf32> to vector<8x64xbf16>
      %c0_69 = arith.constant 0 : index
      %c0_70 = arith.constant 0 : index
      %165 = vector.load %arg10[%c0_69, %c0_70] : memref<8x64xbf16, #tpu.memory_space<vmem>>, vector<8x64xbf16>
      tpu.vector_store %arg10[%c0_69, %c0_70], %164 {strides = array<i32>} : memref<8x64xbf16, #tpu.memory_space<vmem>>, vector<8x64xbf16>,
    } else {
    }
    %c0 = arith.constant 0 : index
    %c0_1 = arith.constant 0 : index
    %3 = vector.load %arg8[%c0, %c0_1] : memref<8x64xf32, #tpu.memory_space<vmem>>, vector<1x64xf32>
    %c1 = arith.constant 1 : index
    %c0_2 = arith.constant 0 : index
    %4 = vector.load %arg8[%c1, %c0_2] : memref<8x64xf32, #tpu.memory_space<vmem>>, vector<1x32xf32>
    %c2 = arith.constant 2 : index
    %c0_3 = arith.constant 0 : index
    %5 = vector.load %arg8[%c2, %c0_3] : memref<8x64xf32, #tpu.memory_space<vmem>>, vector<1x32xf32>
    %c3 = arith.constant 3 : index
    %c0_4 = arith.constant 0 : index
    %6 = vector.load %arg8[%c3, %c0_4] : memref<8x64xf32, #tpu.memory_space<vmem>>, vector<1x32xf32>
    %c4 = arith.constant 4 : index
    %c0_5 = arith.constant 0 : index
    %7 = vector.load %arg8[%c4, %c0_5] : memref<8x64xf32, #tpu.memory_space<vmem>>, vector<1x32xf32>
    %c5 = arith.constant 5 : index
    %c0_6 = arith.constant 0 : index
    %8 = vector.load %arg8[%c5, %c0_6] : memref<8x64xf32, #tpu.memory_space<vmem>>, vector<1x32xf32>
    %c8_i32 = arith.constant 8 : i32
    %9 = arith.muli %arg1, %c8_i32 : i32
    %10 = tpu.assume_multiple %9, 8 : i32
    %c0_7 = arith.constant 0 : index
    %11 = arith.index_cast %10 : i32 to index
    %c0_8 = arith.constant 0 : index
    %12 = vector.load %arg2[%c0_7, %11, %c0_8] : memref<1x8x32xf32, #tpu.memory_space<vmem>>, vector<1x8x32xf32>
    %13 = vector.shape_cast %12 : vector<1x8x32xf32> to vector<8x32xf32>
    %14 = arith.truncf %13 : vector<8x32xf32> to vector<8x32xbf16>
    %c0_9 = arith.constant 0 : index
    %c0_10 = arith.constant 0 : index
    %15 = vector.load %arg3[%c0_9, %c0_10] : memref<32x32xbf16, #tpu.memory_space<vmem>>, vector<32x32xbf16>
    %cst = arith.constant dense<0.000000e+00> : vector<8x32xf32>
    %16 = tpu.matmul %14, %15, %cst {dimension_numbers = #tpu.dot_dimension_numbers<[1], [0], [0], [1], [0, 0, 1, 1], [], []>} : vector<8x32xbf16>, vector<32x32xbf16>, vector<8x32xf32> -> vector<8x32xf32>
    %17 = arith.truncf %16 : vector<8x32xf32> to vector<8x32xbf16>
    %18 = vector.extract_strided_slice %17 {offsets = [0, 0], sizes = [8, 8], strides = [1, 1]} : vector<8x32xbf16> to vector<8x8xbf16>
    %c0_11 = arith.constant 0 : index
    %c0_12 = arith.constant 0 : index
    %19 = vector.load %arg10[%c0_11, %c0_12] : memref<8x64xbf16, #tpu.memory_space<vmem>>, vector<8x8xbf16>
    %c0_13 = arith.constant 0 : index
    %c32 = arith.constant 32 : index
    %20 = vector.load %arg10[%c0_13, %c32] : memref<8x64xbf16, #tpu.memory_space<vmem>>, vector<8x8xbf16>
    %cst_14 = arith.constant dense<0.000000e+00> : vector<8x8xf32>
    %21 = tpu.matmul %18, %19, %cst_14 {dimension_numbers = #tpu.dot_dimension_numbers<[1], [1], [0], [0], [0, 0, 1, 0], [], []>} : vector<8x8xbf16>, vector<8x8xbf16>, vector<8x8xf32> -> vector<8x8xf32>
    %cst_15 = arith.constant 0.353553385 : f32
    %22 = vector.broadcast %cst_15 : f32 to vector<8x8xf32>
    %23 = arith.mulf %21, %22 : vector<8x8xf32>
    %cst_16 = arith.constant dense<0xFF800000> : vector<8xf32>
    %24 = vector.multi_reduction <maximumf>, %23, %cst_16 [1] : vector<8x8xf32> to vector<8xf32>
    %25 = vector.shape_cast %24 : vector<8xf32> to vector<8x1xf32>
    %26 = vector.broadcast %25 : vector<8x1xf32> to vector<8x8xf32>
    %27 = arith.subf %23, %26 : vector<8x8xf32>
    %28 = math.exp %27 : vector<8x8xf32>
    %cst_17 = arith.constant dense<0.000000e+00> : vector<8xf32>
    %29 = vector.multi_reduction <add>, %28, %cst_17 [1] : vector<8x8xf32> to vector<8xf32>
    %30 = vector.shape_cast %29 : vector<8xf32> to vector<8x1xf32>
    %31 = tpu.reciprocal %30 {approx = true} : vector<8x1xf32> -> vector<8x1xf32>
    %32 = vector.broadcast %31 : vector<8x1xf32> to vector<8x8xf32>
    %33 = arith.mulf %28, %32 : vector<8x8xf32>
    %34 = arith.truncf %33 : vector<8x8xf32> to vector<8x8xbf16>
    %cst_18 = arith.constant dense<0.000000e+00> : vector<8x8xf32>
    %35 = tpu.matmul %34, %20, %cst_18 {dimension_numbers = #tpu.dot_dimension_numbers<[1], [0], [0], [1], [0, 0, 1, 1], [], []>} : vector<8x8xbf16>, vector<8x8xbf16>, vector<8x8xf32> -> vector<8x8xf32>
    %36 = vector.extract_strided_slice %17 {offsets = [0, 8], sizes = [8, 8], strides = [1, 1]} : vector<8x32xbf16> to vector<8x8xbf16>
    %c0_19 = arith.constant 0 : index
    %c8 = arith.constant 8 : index
    %37 = vector.load %arg10[%c0_19, %c8] : memref<8x64xbf16, #tpu.memory_space<vmem>>, vector<8x8xbf16>
    %c0_20 = arith.constant 0 : index
    %c40 = arith.constant 40 : index
    %38 = vector.load %arg10[%c0_20, %c40] : memref<8x64xbf16, #tpu.memory_space<vmem>>, vector<8x8xbf16>
    %cst_21 = arith.constant dense<0.000000e+00> : vector<8x8xf32>
    %39 = tpu.matmul %36, %37, %cst_21 {dimension_numbers = #tpu.dot_dimension_numbers<[1], [1], [0], [0], [0, 0, 1, 0], [], []>} : vector<8x8xbf16>, vector<8x8xbf16>, vector<8x8xf32> -> vector<8x8xf32>
    %cst_22 = arith.constant 0.353553385 : f32
    %40 = vector.broadcast %cst_22 : f32 to vector<8x8xf32>
    %41 = arith.mulf %39, %40 : vector<8x8xf32>
    %cst_23 = arith.constant dense<0xFF800000> : vector<8xf32>
    %42 = vector.multi_reduction <maximumf>, %41, %cst_23 [1] : vector<8x8xf32> to vector<8xf32>
    %43 = vector.shape_cast %42 : vector<8xf32> to vector<8x1xf32>
    %44 = vector.broadcast %43 : vector<8x1xf32> to vector<8x8xf32>
    %45 = arith.subf %41, %44 : vector<8x8xf32>
    %46 = math.exp %45 : vector<8x8xf32>
    %cst_24 = arith.constant dense<0.000000e+00> : vector<8xf32>
    %47 = vector.multi_reduction <add>, %46, %cst_24 [1] : vector<8x8xf32> to vector<8xf32>
    %48 = vector.shape_cast %47 : vector<8xf32> to vector<8x1xf32>
    %49 = tpu.reciprocal %48 {approx = true} : vector<8x1xf32> -> vector<8x1xf32>
    %50 = vector.broadcast %49 : vector<8x1xf32> to vector<8x8xf32>
    %51 = arith.mulf %46, %50 : vector<8x8xf32>
    %52 = arith.truncf %51 : vector<8x8xf32> to vector<8x8xbf16>
    %cst_25 = arith.constant dense<0.000000e+00> : vector<8x8xf32>
    %53 = tpu.matmul %52, %38, %cst_25 {dimension_numbers = #tpu.dot_dimension_numbers<[1], [0], [0], [1], [0, 0, 1, 1], [], []>} : vector<8x8xbf16>, vector<8x8xbf16>, vector<8x8xf32> -> vector<8x8xf32>
    %54 = vector.extract_strided_slice %17 {offsets = [0, 16], sizes = [8, 8], strides = [1, 1]} : vector<8x32xbf16> to vector<8x8xbf16>
    %c0_26 = arith.constant 0 : index
    %c16 = arith.constant 16 : index
    %55 = vector.load %arg10[%c0_26, %c16] : memref<8x64xbf16, #tpu.memory_space<vmem>>, vector<8x8xbf16>
    %c0_27 = arith.constant 0 : index
    %c48 = arith.constant 48 : index
    %56 = vector.load %arg10[%c0_27, %c48] : memref<8x64xbf16, #tpu.memory_space<vmem>>, vector<8x8xbf16>
    %cst_28 = arith.constant dense<0.000000e+00> : vector<8x8xf32>
    %57 = tpu.matmul %54, %55, %cst_28 {dimension_numbers = #tpu.dot_dimension_numbers<[1], [1], [0], [0], [0, 0, 1, 0], [], []>} : vector<8x8xbf16>, vector<8x8xbf16>, vector<8x8xf32> -> vector<8x8xf32>
    %cst_29 = arith.constant 0.353553385 : f32
    %58 = vector.broadcast %cst_29 : f32 to vector<8x8xf32>
    %59 = arith.mulf %57, %58 : vector<8x8xf32>
    %cst_30 = arith.constant dense<0xFF800000> : vector<8xf32>
    %60 = vector.multi_reduction <maximumf>, %59, %cst_30 [1] : vector<8x8xf32> to vector<8xf32>
    %61 = vector.shape_cast %60 : vector<8xf32> to vector<8x1xf32>
    %62 = vector.broadcast %61 : vector<8x1xf32> to vector<8x8xf32>
    %63 = arith.subf %59, %62 : vector<8x8xf32>
    %64 = math.exp %63 : vector<8x8xf32>
    %cst_31 = arith.constant dense<0.000000e+00> : vector<8xf32>
    %65 = vector.multi_reduction <add>, %64, %cst_31 [1] : vector<8x8xf32> to vector<8xf32>
    %66 = vector.shape_cast %65 : vector<8xf32> to vector<8x1xf32>
    %67 = tpu.reciprocal %66 {approx = true} : vector<8x1xf32> -> vector<8x1xf32>
    %68 = vector.broadcast %67 : vector<8x1xf32> to vector<8x8xf32>
    %69 = arith.mulf %64, %68 : vector<8x8xf32>
    %70 = arith.truncf %69 : vector<8x8xf32> to vector<8x8xbf16>
    %cst_32 = arith.constant dense<0.000000e+00> : vector<8x8xf32>
    %71 = tpu.matmul %70, %56, %cst_32 {dimension_numbers = #tpu.dot_dimension_numbers<[1], [0], [0], [1], [0, 0, 1, 1], [], []>} : vector<8x8xbf16>, vector<8x8xbf16>, vector<8x8xf32> -> vector<8x8xf32>
    %72 = vector.extract_strided_slice %17 {offsets = [0, 24], sizes = [8, 8], strides = [1, 1]} : vector<8x32xbf16> to vector<8x8xbf16>
    %c0_33 = arith.constant 0 : index
    %c24 = arith.constant 24 : index
    %73 = vector.load %arg10[%c0_33, %c24] : memref<8x64xbf16, #tpu.memory_space<vmem>>, vector<8x8xbf16>
    %c0_34 = arith.constant 0 : index
    %c56 = arith.constant 56 : index
    %74 = vector.load %arg10[%c0_34, %c56] : memref<8x64xbf16, #tpu.memory_space<vmem>>, vector<8x8xbf16>
    %cst_35 = arith.constant dense<0.000000e+00> : vector<8x8xf32>
    %75 = tpu.matmul %72, %73, %cst_35 {dimension_numbers = #tpu.dot_dimension_numbers<[1], [1], [0], [0], [0, 0, 1, 0], [], []>} : vector<8x8xbf16>, vector<8x8xbf16>, vector<8x8xf32> -> vector<8x8xf32>
    %cst_36 = arith.constant 0.353553385 : f32
    %76 = vector.broadcast %cst_36 : f32 to vector<8x8xf32>
    %77 = arith.mulf %75, %76 : vector<8x8xf32>
    %cst_37 = arith.constant dense<0xFF800000> : vector<8xf32>
    %78 = vector.multi_reduction <maximumf>, %77, %cst_37 [1] : vector<8x8xf32> to vector<8xf32>
    %79 = vector.shape_cast %78 : vector<8xf32> to vector<8x1xf32>
    %80 = vector.broadcast %79 : vector<8x1xf32> to vector<8x8xf32>
    %81 = arith.subf %77, %80 : vector<8x8xf32>
    %82 = math.exp %81 : vector<8x8xf32>
    %cst_38 = arith.constant dense<0.000000e+00> : vector<8xf32>
    %83 = vector.multi_reduction <add>, %82, %cst_38 [1] : vector<8x8xf32> to vector<8xf32>
    %84 = vector.shape_cast %83 : vector<8xf32> to vector<8x1xf32>
    %85 = tpu.reciprocal %84 {approx = true} : vector<8x1xf32> -> vector<8x1xf32>
    %86 = vector.broadcast %85 : vector<8x1xf32> to vector<8x8xf32>
    %87 = arith.mulf %82, %86 : vector<8x8xf32>
    %88 = arith.truncf %87 : vector<8x8xf32> to vector<8x8xbf16>
    %cst_39 = arith.constant dense<0.000000e+00> : vector<8x8xf32>
    %89 = tpu.matmul %88, %74, %cst_39 {dimension_numbers = #tpu.dot_dimension_numbers<[1], [0], [0], [1], [0, 0, 1, 1], [], []>} : vector<8x8xbf16>, vector<8x8xbf16>, vector<8x8xf32> -> vector<8x8xf32>
    %90 = tpu.concatenate %35, %53, %71, %89 in 1 : vector<8x8xf32>, vector<8x8xf32>, vector<8x8xf32>, vector<8x8xf32> -> vector<8x32xf32>
    %91 = arith.truncf %90 : vector<8x32xf32> to vector<8x32xbf16>
    %c0_40 = arith.constant 0 : index
    %c0_41 = arith.constant 0 : index
    %92 = vector.load %arg5[%c0_40, %c0_41] : memref<32x32xbf16, #tpu.memory_space<vmem>>, vector<32x32xbf16>
    %cst_42 = arith.constant dense<0.000000e+00> : vector<8x32xf32>
    %93 = tpu.matmul %91, %92, %cst_42 {dimension_numbers = #tpu.dot_dimension_numbers<[1], [0], [0], [1], [0, 0, 1, 1], [], []>} : vector<8x32xbf16>, vector<32x32xbf16>, vector<8x32xf32> -> vector<8x32xf32>
    %94 = arith.addf %13, %93 : vector<8x32xf32>
    %cst_43 = arith.constant dense<0.000000e+00> : vector<8xf32>
    %95 = vector.multi_reduction <add>, %94, %cst_43 [1] : vector<8x32xf32> to vector<8xf32>
    %96 = vector.shape_cast %95 : vector<8xf32> to vector<8x1xf32>
    %cst_44 = arith.constant 3.200000e+01 : f32
    %97 = vector.broadcast %cst_44 : f32 to vector<8x1xf32>
    %98 = arith.divf %96, %97 : vector<8x1xf32>
    %99 = vector.broadcast %98 : vector<8x1xf32> to vector<8x32xf32>
    %100 = arith.subf %94, %99 : vector<8x32xf32>
    %101 = vector.broadcast %98 : vector<8x1xf32> to vector<8x32xf32>
    %102 = arith.subf %94, %101 : vector<8x32xf32>
    %103 = arith.mulf %100, %102 : vector<8x32xf32>
    %cst_45 = arith.constant dense<0.000000e+00> : vector<8xf32>
    %104 = vector.multi_reduction <add>, %103, %cst_45 [1] : vector<8x32xf32> to vector<8xf32>
    %105 = vector.shape_cast %104 : vector<8xf32> to vector<8x1xf32>
    %cst_46 = arith.constant 3.200000e+01 : f32
    %106 = vector.broadcast %cst_46 : f32 to vector<8x1xf32>
    %107 = arith.divf %105, %106 : vector<8x1xf32>
    %108 = vector.broadcast %98 : vector<8x1xf32> to vector<8x32xf32>
    %109 = arith.subf %94, %108 : vector<8x32xf32>
    %cst_47 = arith.constant 9.99999974E-6 : f32
    %110 = vector.broadcast %cst_47 : f32 to vector<8x1xf32>
    %111 = arith.addf %107, %110 : vector<8x1xf32>
    %112 = math.rsqrt %111 : vector<8x1xf32>
    %113 = vector.broadcast %112 : vector<8x1xf32> to vector<8x32xf32>
    %114 = arith.mulf %109, %113 : vector<8x32xf32>
    %115 = vector.broadcast %5 : vector<1x32xf32> to vector<8x32xf32>
    %116 = arith.mulf %114, %115 : vector<8x32xf32>
    %117 = vector.broadcast %6 : vector<1x32xf32> to vector<8x32xf32>
    %118 = arith.addf %116, %117 : vector<8x32xf32>
    %119 = arith.truncf %118 : vector<8x32xf32> to vector<8x32xbf16>
    %c0_48 = arith.constant 0 : index
    %c0_49 = arith.constant 0 : index
    %120 = vector.load %arg6[%c0_48, %c0_49] : memref<32x64xbf16, #tpu.memory_space<vmem>>, vector<32x64xbf16>
    %cst_50 = arith.constant dense<0.000000e+00> : vector<8x64xf32>
    %121 = tpu.matmul %119, %120, %cst_50 {dimension_numbers = #tpu.dot_dimension_numbers<[1], [0], [0], [1], [0, 0, 1, 1], [], []>} : vector<8x32xbf16>, vector<32x64xbf16>, vector<8x64xf32> -> vector<8x64xf32>
    %122 = vector.broadcast %3 : vector<1x64xf32> to vector<8x64xf32>
    %123 = arith.addf %121, %122 : vector<8x64xf32>
    %cst_51 = arith.constant 0.000000e+00 : f32
    %124 = vector.broadcast %cst_51 : f32 to vector<8x64xf32>
    %125 = arith.maximumf %123, %124 : vector<8x64xf32>
    %126 = arith.truncf %125 : vector<8x64xf32> to vector<8x64xbf16>
    %c0_52 = arith.constant 0 : index
    %c0_53 = arith.constant 0 : index
    %127 = vector.load %arg7[%c0_52, %c0_53] : memref<64x32xbf16, #tpu.memory_space<vmem>>, vector<64x32xbf16>
    %cst_54 = arith.constant dense<0.000000e+00> : vector<8x32xf32>
    %128 = tpu.matmul %126, %127, %cst_54 {dimension_numbers = #tpu.dot_dimension_numbers<[1], [0], [0], [1], [0, 0, 1, 1], [], []>} : vector<8x64xbf16>, vector<64x32xbf16>, vector<8x32xf32> -> vector<8x32xf32>
    %129 = vector.broadcast %4 : vector<1x32xf32> to vector<8x32xf32>
    %130 = arith.addf %128, %129 : vector<8x32xf32>
    %131 = arith.addf %118, %130 : vector<8x32xf32>
    %cst_55 = arith.constant dense<0.000000e+00> : vector<8xf32>
    %132 = vector.multi_reduction <add>, %131, %cst_55 [1] : vector<8x32xf32> to vector<8xf32>
    %133 = vector.shape_cast %132 : vector<8xf32> to vector<8x1xf32>
    %cst_56 = arith.constant 3.200000e+01 : f32
    %134 = vector.broadcast %cst_56 : f32 to vector<8x1xf32>
    %135 = arith.divf %133, %134 : vector<8x1xf32>
    %136 = vector.broadcast %135 : vector<8x1xf32> to vector<8x32xf32>
    %137 = arith.subf %131, %136 : vector<8x32xf32>
    %138 = vector.broadcast %135 : vector<8x1xf32> to vector<8x32xf32>
    %139 = arith.subf %131, %138 : vector<8x32xf32>
    %140 = arith.mulf %137, %139 : vector<8x32xf32>
    %cst_57 = arith.constant dense<0.000000e+00> : vector<8xf32>
    %141 = vector.multi_reduction <add>, %140, %cst_57 [1] : vector<8x32xf32> to vector<8xf32>
    %142 = vector.shape_cast %141 : vector<8xf32> to vector<8x1xf32>
    %cst_58 = arith.constant 3.200000e+01 : f32
    %143 = vector.broadcast %cst_58 : f32 to vector<8x1xf32>
    %144 = arith.divf %142, %143 : vector<8x1xf32>
    %145 = vector.broadcast %135 : vector<8x1xf32> to vector<8x32xf32>
    %146 = arith.subf %131, %145 : vector<8x32xf32>
    %cst_59 = arith.constant 9.99999974E-6 : f32
    %147 = vector.broadcast %cst_59 : f32 to vector<8x1xf32>
    %148 = arith.addf %144, %147 : vector<8x1xf32>
    %149 = math.rsqrt %148 : vector<8x1xf32>
    %150 = vector.broadcast %149 : vector<8x1xf32> to vector<8x32xf32>
    %151 = arith.mulf %146, %150 : vector<8x32xf32>
    %152 = vector.broadcast %7 : vector<1x32xf32> to vector<8x32xf32>
    %153 = arith.mulf %151, %152 : vector<8x32xf32>
    %154 = vector.broadcast %8 : vector<1x32xf32> to vector<8x32xf32>
    %155 = arith.addf %153, %154 : vector<8x32xf32>
    %c0_60 = arith.constant 0 : index
    %c0_61 = arith.constant 0 : index
    %c0_62 = arith.constant 0 : index
    %156 = vector.load %arg9[%c0_60, %c0_61, %c0_62] : memref<1x8x32xf32, #tpu.memory_space<vmem>>, vector<1x8x32xf32>
    %157 = vector.shape_cast %156 : vector<1x8x32xf32> to vector<8x32xf32>
    %158 = vector.shape_cast %155 : vector<8x32xf32> to vector<1x8x32xf32>
    tpu.vector_store %arg9[%c0_60, %c0_61, %c0_62], %158 {strides = array<i32>} : memref<1x8x32xf32, #tpu.memory_space<vmem>>, vector<1x8x32xf32>,
    return
  }
  func.func @transform_0(%arg0: i32, %arg1: i32) -> (i32, i32, i32) {
    %c0_i32 = arith.constant 0 : i32
    %c0_i32_0 = arith.constant 0 : i32
    %c0_i32_1 = arith.constant 0 : i32
    return %arg0, %c0_i32, %c0_i32_0 : i32, i32, i32
  }
  func.func @transform_1(%arg0: i32, %arg1: i32) -> (i32, i32) {
    %c0_i32 = arith.constant 0 : i32
    %c0_i32_0 = arith.constant 0 : i32
    %c0_i32_1 = arith.constant 0 : i32
    return %c0_i32, %c0_i32_0 : i32, i32
  }
  func.func @transform_2(%arg0: i32, %arg1: i32) -> (i32, i32) {
    %c0_i32 = arith.constant 0 : i32
    %c0_i32_0 = arith.constant 0 : i32
    %c0_i32_1 = arith.constant 0 : i32
    return %c0_i32, %c0_i32_0 : i32, i32
  }
  func.func @transform_3(%arg0: i32, %arg1: i32) -> (i32, i32) {
    %c0_i32 = arith.constant 0 : i32
    %c0_i32_0 = arith.constant 0 : i32
    %c0_i32_1 = arith.constant 0 : i32
    return %c0_i32, %c0_i32_0 : i32, i32
  }
  func.func @transform_4(%arg0: i32, %arg1: i32) -> (i32, i32) {
    %c0_i32 = arith.constant 0 : i32
    %c0_i32_0 = arith.constant 0 : i32
    %c0_i32_1 = arith.constant 0 : i32
    return %c0_i32, %c0_i32_0 : i32, i32
  }
  func.func @transform_5(%arg0: i32, %arg1: i32) -> (i32, i32) {
    %c0_i32 = arith.constant 0 : i32
    %c0_i32_0 = arith.constant 0 : i32
    %c0_i32_1 = arith.constant 0 : i32
    return %c0_i32, %c0_i32_0 : i32, i32
  }
  func.func @transform_6(%arg0: i32, %arg1: i32) -> (i32, i32) {
    %c0_i32 = arith.constant 0 : i32
    %c0_i32_0 = arith.constant 0 : i32
    %c0_i32_1 = arith.constant 0 : i32
    return %c0_i32, %c0_i32_0 : i32, i32
  }
  func.func @transform_7(%arg0: i32, %arg1: i32) -> (i32, i32, i32) {
    %c0_i32 = arith.constant 0 : i32
    %c0_i32_0 = arith.constant 0 : i32
    return %arg0, %arg1, %c0_i32 : i32, i32, i32
  }
}

</mosaic_0001>

<bundles_post_ra>
// kernel: tpu_custom_call.1
= control target key start
LH: loop header
LB: loop body
LE: loop exit
PB: predicated region body
PF: predicated region fallthrough
CT: control target
= control target key end

     0   :  { %s2160_s0 = inlined_call_operand.vmem [shape: f32[2,8,32], index: 0, kind: input, shape index: {}]   ;;  %s2161_s1 = inlined_call_operand.vmem [shape: bf16[32,32], index: 1, kind: input, shape index: {}]   ;;  %s2162_s2 = inlined_call_operand.vmem [shape: bf16[32,64], index: 2, kind: input, shape index: {}]   ;;  %s2163_s3 = inlined_call_operand.hbm [shape: bf16[32,32], index: 3, kind: input, shape index: {}]   ;;  %s2164_s4 = inlined_call_operand.hbm [shape: bf16[32,64], index: 4, kind: input, shape index: {}]   ;;  %s2165_s5 = inlined_call_operand.vmem [shape: bf16[64,32], index: 5, kind: input, shape index: {}]   ;;  %s2166_s6 = inlined_call_operand.hbm [shape: f32[8,64], index: 6, kind: input, shape index: {}]   ;;  %s2167_s7 = inlined_call_operand.hbm [shape: f32[2,8,32], index: 7, kind: output, shape index: {}]  }
   0x1   :  { %2175 = sst [smem:[#allocation17_spill]] %s2164_s4 }
   0x2   :  { %12 = vsyncpa [#allocation4], 0 }
   0x3   :  { %13 = vsyncpa [#allocation7], 0 }
   0x4   :  { %14 = vsyncpa [#allocation5], 0 }
   0x5   :  { %16 = vsyncpa [#allocation5 + $0x1], 0  ;;  %s1844_s24 = smov 0   ;;  %s1846_s25 = smov 0  }
   0x6   :  { %s1848_s26 = smov 0   ;;  %s1850_s27 = smov 0  }
   0x7   :  { %s1852_s28 = smov 0   ;;  %s1854_s29 = smov 0  }
   0x8 LB: > { %2176 = sst [smem:[#allocation13_spill]] %s1772_s26  ;;  %s1307_s30 = sadd.s32 4294967295, %s1784_s29   ;;  %s1784_s29 = sphi %s1854_s29, %s22_s29   ;;  %s1780_s28 = sphi %s1852_s28, %s2194_s28   ;;  %s1776_s27 = sphi %s1850_s27, %s2193_s27   ;;  %s1772_s26 = sphi %s1848_s26, %s2192_s26   ;;  %s1768_s25 = sphi %s1846_s25, %s2196_s25   ;;  %s1764_s24 = sphi %s1844_s24, %s2195_s24  }
   0x9   : > { %2177 = sst [smem:[#allocation14_spill]] %s1780_s28  ;;  %s1308_s8 = sadd.s32 4294967294, %s1784_s29  }
   0xa   : > { %s34_s9 = sadd.s32 1, %s1780_s28  ;;  %s195_s10 = sadd.s32 1, %s1772_s26 }
   0xb   : > { %p36_p0 = scmp.ge.s32.totalorder %s34_s9, 2  ;;  %p205_p1 = scmp.ne.s32.totalorder %s1772_s26, %s1768_s25 }
   0xc   : > { %p206_p2 = scmp.eq.s32.totalorder %s1307_s30, 1  ;;  %p211_p3 = scmp.ne.s32.totalorder %s1768_s25, %s1764_s24 }
   0xd   : > { %s2198_s9 = smov (%p36_p0, %s34_s9), 0  ;;  %p212_p5 = scmp.eq.s32.totalorder %s1308_s8, 1 }
   0xe   : > { %2178 = sst [smem:[#allocation15_spill]] %s2198_s9  ;;  %p1884_p4 = por %p206_p2, %p205_p1 }
   0xf   : > { %s190_s12 = ssub.s32 %s1780_s28, %s2198_s9  ;;  %p1309_p6 = scmp.ge.s32.totalorder %s1784_s29, 1 }
  0x10   : > { %s2179_s11 = scalar_select %p1884_p4, 1, 0 }
  0x11   : > { %p193_p7 = scmp.eq.s32.totalorder %s190_s12, 0  ;;  %p1891_p8 = por %p212_p5, %p211_p3 }
  0x12   : > { %p219_p9 = scmp.lt.s32.totalorder %s1784_s29, 3  ;;  %p1903_p11 = scmp.eq.s32.totalorder %s1307_s30, 0 }
  0x13   : > { %s2180_s13 = scalar_select %p1891_p8, 1, 0 }
  0x14   : > { %s1897_s14 = scalar_select %p193_p7, %s1772_s26, %s195_s10  }
  0x15   : > { %p1899_p10 = pnand %p1309_p6, %p219_p9  ;;  %s1786_s17 = smov [#allocation6]  }
  0x16   : > { %2181 = sst [smem:[#allocation16_spill]] %s1897_s14  ;;  %s250_s18 = sshll.u32 %s1786_s17, 4  ;;  %s251_s18 = int_to_ptr.vmem [resolvable:$true] %s250_s18 }
  0x17   : > { %s2182_s15 = scalar_select %p1899_p10, 1, 0 }
  0x18   : > { %s2183_s16 = scalar_select %p1903_p11, 1, 0 }
  0x19   : > { %p1495_p12 = pneg %p1899_p10  ;;  %s1787_s20 = smov [#allocation3]  }
  0x1a   : > { %s237_s21 = sshll.u32 %s1787_s20, 4  ;;  %s2185_s4 = sld [smem:[#allocation17_spill]]  ;;  %s238_s21 = int_to_ptr.vmem [resolvable:$true] %s237_s21 }
  0x1b   : > { %p1911_p13 = pnand %p1903_p11, %p1495_p12 }
  0x1d   : > { %p1923_p1 = pneg %p1911_p13 }
  0x20   : > { %s1614_s30 = scalar_lea.hbm %s2185_s4, 256 }
  0x21   : > { %p1615_p0 = scmp.ne.s32.totalorder %s2185_s4, %s1614_s30  ;;  %p1621_p5 = scmp.lt.u32.totalorder %s1614_s30, %s2185_s4 }
  0x23   : > { %p1617_p2 = pnand %p1923_p1, %p1615_p0 }
  0x25   : > { %p1618_p3 = pneg %p1617_p2 }
  0x27   : > { %p1623_p6 = pnand %p1621_p5, %p1618_p3 }
  0x29   : > { %1626 = shalt.err (!%p1623_p6)
}
  0x2a   : > { %s1627_s20 = scalar_lea.vmem %s251_s18, 256  ;;  %p1635_p8 = scmp.lt.s32.totalorder %s251_s18, %s251_s18 }
  0x2b   : > { %p1628_p7 = scmp.ne.s32.totalorder %s251_s18, %s1627_s20  ;;  %p1636_p4 = scmp.lt.s32.totalorder %s1627_s20, %s1627_s20 }
  0x2d   : > { %p1630_p9 = pnand %p1628_p7, %p1923_p1  ;;  %p1637_p11 = por %p1636_p4, %p1635_p8 }
  0x2f   : > { %p1631_p12 = pneg %p1630_p9 }
  0x31   : > { %p1638_p10 = pnand %p1637_p11, %p1631_p12 }
  0x33   : > { %1641 = shalt.err (!%p1638_p10)
}
  0x34   : > { %s1788_s22 = smov 64   ;;  %s1789_s23 = smov 4  }
  0x35   : > { %1501 = dma.hbm_to_vmem [thread:$0]  (!%p1911_p13), %s2185_s4, 256, %s251_s18, [#allocation7], %s1788_s22, %s1788_s22, %s1789_s23  }
  0x36   : > { %s1642_s17 = scalar_lea.hbm %s2163_s3, 256 }
  0x37   : > { %p1643_p4 = scmp.ne.s32.totalorder %s2163_s3, %s1642_s17  ;;  %p1649_p11 = scmp.lt.u32.totalorder %s1642_s17, %s2163_s3 }
  0x39   : > { %p1645_p8 = pnand %p1643_p4, %p1923_p1 }
  0x3b   : > { %p1646_p10 = pneg %p1645_p8 }
  0x3d   : > { %p1651_p0 = pnand %p1649_p11, %p1646_p10 }
  0x3f   : > { %1654 = shalt.err (!%p1651_p0)
}
  0x40   : > { %s1655_s9 = scalar_lea.vmem %s238_s21, 256  ;;  %p1663_p6 = scmp.lt.s32.totalorder %s238_s21, %s238_s21 }
  0x41   : > { %p1656_p2 = scmp.ne.s32.totalorder %s238_s21, %s1655_s9  ;;  %p1664_p7 = scmp.lt.s32.totalorder %s1655_s9, %s1655_s9 }
  0x43   : > { %p1658_p3 = pnand %p1656_p2, %p1923_p1  ;;  %p1665_p9 = por %p1664_p7, %p1663_p6 }
  0x45   : > { %p1659_p5 = pneg %p1658_p3 }
  0x47   : > { %p1666_p12 = pnand %p1665_p9, %p1659_p5 }
  0x49   : > { %1669 = shalt.err (!%p1666_p12)
}
  0x4a   : > { %1498 = dma.hbm_to_vmem [thread:$0]  (!%p1911_p13), %s2163_s3, 256, %s238_s21, [#allocation4], %s1788_s22, %s1788_s22, %s1789_s23  }
  0x4b   : > { %s1790_s26 = smov [#allocation8]   ;;  %s1670_s10 = scalar_lea.hbm %s2166_s6, 128 }
  0x4c   : > { %s267_s18 = sshll.u32 %s1790_s26, 4  ;;  %p1671_p4 = scmp.ne.s32.totalorder %s2166_s6, %s1670_s10  ;;  %s268_s18 = int_to_ptr.vmem [resolvable:$true] %s267_s18 }
  0x4d   : > { %p1677_p11 = scmp.lt.u32.totalorder %s1670_s10, %s2166_s6 }
  0x4e   : > { %p1673_p8 = pnand %p1671_p4, %p1923_p1 }
  0x50   : > { %p1674_p10 = pneg %p1673_p8 }
  0x52   : > { %p1679_p0 = pnand %p1677_p11, %p1674_p10 }
  0x54   : > { %1682 = shalt.err (!%p1679_p0)
}
  0x55   : > { %s1683_s21 = scalar_lea.vmem %s268_s18, 128  ;;  %p1691_p6 = scmp.lt.s32.totalorder %s268_s18, %s268_s18 }
  0x56   : > { %p1684_p2 = scmp.ne.s32.totalorder %s268_s18, %s1683_s21  ;;  %p1692_p7 = scmp.lt.s32.totalorder %s1683_s21, %s1683_s21 }
  0x58   : > { %p1686_p3 = pnand %p1684_p2, %p1923_p1  ;;  %p1693_p9 = por %p1692_p7, %p1691_p6 }
  0x5a   : > { %p1687_p5 = pneg %p1686_p3 }
  0x5c   : > { %p1694_p12 = pnand %p1693_p9, %p1687_p5 }
  0x5e   : > { %1697 = shalt.err (!%p1694_p12)
}
  0x5f   : > { %1504 = dma.hbm_to_vmem [thread:$0]  (!%p1911_p13), %s2166_s6, 128, %s268_s18, [#allocation7]  }
  0x60   : > { %p2187_p4 = scmp.ne.s32.totalorder %s2182_s15, 0 }
  0x61   : > { %p2188_p8 = scmp.ne.s32.totalorder (!%p2187_p4), %s2183_s16, 0 }
  0x62   : > { %287 = sbr.rel (%p2187_p4) target bundleno = 2640 (0xa50), region = 48 }
  0x69   : > { %1751 = dma.done.wait (%p2188_p8), [#allocation4], 256  }
  0x6a   : > { %1753 = vsyncadd (%p2188_p8), [#allocation4], 4294967040 }
  0x6b   : > { %1755 = dma.done.wait (%p2188_p8), [#allocation7], 384  }
  0x6c   : > { %1757 = vsyncadd (%p2188_p8), [#allocation7], 4294966912  ;;  %p326_p1 = scmp.lt.s32.totalorder %s1776_s27, 1  ;;  %v1791_v0 = vmov 0.0   ;;  %vm1792_vm0 = vmmov 0   ;;  %v1581_v1 = vld [vmem:[%s2162_s2] sm:$0xff]  }
  0x6d   : > { %1389 = vmatprep.subr.bf16.mxu1 %v1791_v0  ;;  %1393 = vmatprep.mubr.msk.bf16.mxu1 %vm1792_vm0, %v1791_v0  ;;  %v1582_v2 = vld [vmem:[%s2162_s2 + $0x8] sm:$0xff]   ;;  %vm353_vm1 = vcmask 261120   ;;  %v1583_v4 = vld [vmem:[%s2161_s1] sm:$0xff]   ;;  %vm398_vm2 = vcmask 519168   ;;  %vm472_vm3 = vcmask 64512   ;;  %s1793_s20 = smov 112  }
  0x6e   : > { %s327_s4 = scalar_select %p326_p1, %s1776_s27, 1  ;;  %1405 = vmatprep.subr.bf16.mxu0 %v1791_v0  ;;  %1407 = vmatprep.mubr.msk.bf16.mxu0 %vm1792_vm0, %v1791_v0  ;;  %v1584_v6 = vld [vmem:[%s2161_s1 + $0x8] sm:$0xff]   ;;  %vm540_vm4 = vcmask 1043456   ;;  %vm931_vm5 = vcmask 130048   ;;  %vm933_vm6 = vcmask 195584   ;;  %vm1122_vm7 = vcmask 523264  }
  0x6f   : > { %1390 = vmatpush3.bf16.msra.mxu1 %v1581_v1  ;;  %s1794_s9 = smov 120   ;;  %s1795_s21 = smov 104  }
  0x70   : > { %s1319_s15 = sshll.u32 %s327_s4, 3  ;;  %1391 = vmatprep.subr.bf16.mxu1 %v1791_v0  ;;  %s1796_s22 = smov 96  }
  0x71   : > { %s329_s12 = scalar_lea.vmem %s2160_s0, %s1319_s15  ;;  %s1797_s23 = smov 80  }
  0x72   : > { %v2002_v3 = vld [vmem:[%s329_s12] sm:$0xff]  ;;  %s1798_s4 = smov 72   ;;  %s1799_s15 = smov 88  }
  0x73   : > { %v336_v5 = vpack.c.bf16 %v2002_v3, %v2002_v3  ;;  %1392 = vmatpush3.bf16.msra.mxu1 %v1582_v2  ;;  %s1800_s19 = smov 8   ;;  %s1801_s16 = smov 16  }
  0x74   : > { %1397 = vmatprep.subr.bf16.mxu1 %v1791_v0  ;;  %s1802_s12 = smov 24   ;;  %p2189_p10 = scmp.ne.s32.totalorder %s2179_s11, 0 }
  0x76   : > { %1394 = vmatmul.mubr.msk.bf16.vlgmr.msra.gmra.mrb[0].mxu1 %vm353_vm1, %v336_v5 }
  0x77   : > { %1398 = vmatpush3.bf16.msra.mxu1 %v1583_v4  ;;  %1401 = vmatprep.mubr.msk.bf16.mxu1 %vm1792_vm0, %v1791_v0 }
  0x78   : > { %1399 = vmatprep.subr.bf16.mxu1 %v1791_v0 }
  0x7b   : > { %1400 = vmatpush3.bf16.msra.mxu1 %v1584_v6 }
  0x7c   : > { %1411 = vmatprep.subr.bf16.mxu1 %v1791_v0 }
  0x7e   : > { %1402 = vmatmul.mubr.msk.bf16.vlgmr.msra.gmra.mrb[4].mxu1 %vm353_vm1, %v336_v5 }
  0x7f   : > { %1413 = vmatprep.mubr.msk.bf16.mxu1 %vm1792_vm0, %v1791_v0 }
 0x149   : > { %v391_v7 = vpop.f32.mrb[0].mxu1 }
 0x14a   : > { %v397_v8 = vpack.c.bf16 %v391_v7, %v391_v7  ;;  %v1395_v9 = vpop.f32.mrb[1].mxu1 }
 0x14b   : > { %v394_v10 = vpop.f32.mrb[2].mxu1 }
 0x14c   : > { %399 = vst.msk [vmem:[#allocation2] sm:$0xf] %vm398_vm2, %v397_v8  ;;  %v1396_v11 = vpop.f32.mrb[3].mxu1 }
 0x151   : > { %v464_v12 = vpop.f32.mrb[4].mxu1 }
 0x152   : > { %v1403_v13 = vpop.f32.mrb[5].mxu1  ;;  %v470_v19 = vpack.c.bf16 %v464_v12, %v464_v12 }
 0x153   : > { %v471_v14 = vld [vmem:[#allocation2] sm:$0xf]  ;;  %v467_v15 = vpop.f32.mrb[6].mxu1 }
 0x154   : > { %v477_v16 = vsel %vm472_vm3, %v471_v14, 0  ;;  %v2023_v17 = vcombine.low %v471_v14, %v471_v14  ;;  %v1404_v18 = vpop.f32.mrb[7].mxu1 }
 0x155   : > { %1406 = vmatpush3.bf16.xpose.msra.mxu0 %v477_v16 }
 0x156   : > { %698 = vrot.lane.b32.xlu1 %v2023_v17, %s1793_s20  ;;  %587 = vrot.lane.b32.xlu0 %v2023_v17, %s1794_s9 }
 0x157   : > { %1417 = vmatprep.subr.bf16.mxu0 %v1791_v0 }
 0x15a   : > { %696 = vrot.lane.b32.xlu1 %v470_v19, %s1793_s20  ;;  %585 = vrot.lane.b32.xlu0 %v470_v19, %s1794_s9  ;;  %s323_s20 = sand.u32 1, %s1768_s25  }
 0x15b   : > { %s1318_s9 = sshll.u32 %s323_s20, 3 }
 0x15c   : > { %1408 = vmatmul.mubr.msk.bf16.vlgmr.msra.gmra.mrb[0].mxu0 %vm472_vm3, %v470_v19 }
 0x15d   : > { %1419 = vmatprep.mubr.msk.bf16.mxu0 %vm1792_vm0, %v1791_v0 }
 0x15e   : > { %807 = vrot.lane.b32.xlu1 %v470_v19, %s1795_s21  ;;  %809 = vrot.lane.b32.xlu0 %v2023_v17, %s1795_s21  ;;  %s1353_s21 = sshll.u32 %s1776_s27, 7  ;;  %s1803_s27 = smov [#allocation9]  }
 0x15f   : > { %s1702_s28 = sshll.u32 %s1803_s27, 4  ;;  %s1703_s28 = int_to_ptr.vmem [resolvable:$false] %s1702_s28 }
 0x160   : > { %s1704_s14 = scalar_lea.vmem %s1703_s28, 256 }
 0x1c8   : > { %v588_v20 = vpop.permute.xlu0 %587  ;;  %v699_v22 = vpop.permute.xlu1 %698 }
 0x1c9   : > { %v593_v21 = vsel %vm472_vm3, %v588_v20, 0  ;;  %v704_v24 = vsel %vm472_vm3, %v699_v22, 0 }
 0x1ca   : > { %1418 = vmatpush3.bf16.xpose.msra.mxu0 %v593_v21 }
 0x1cb   : > { %1429 = vmatprep.subr.bf16.mxu0 %v1791_v0 }
 0x1cc   : > { %v586_v23 = vpop.permute.xlu0 %585  ;;  %v697_v26 = vpop.permute.xlu1 %696 }
 0x1d0   : > { %v810_v25 = vpop.permute.xlu0 %809  ;;  %v808_v28 = vpop.permute.xlu1 %807 }
 0x1d1   : > { %1420 = vmatmul.mubr.msk.bf16.vlgmr.msra.gmra.mrb[4].mxu0 %vm472_vm3, %v586_v23  ;;  %v815_v27 = vsel %vm472_vm3, %v810_v25, 0 }
 0x1d2   : > { %1430 = vmatpush3.bf16.xpose.msra.mxu0 %v704_v24  ;;  %1431 = vmatprep.mubr.msk.bf16.mxu0 %vm1792_vm0, %v1791_v0 }
 0x1d3   : > { %1441 = vmatprep.subr.bf16.mxu0 %v1791_v0 }
 0x1d9   : > { %1432 = vmatmul.mubr.msk.bf16.vlgmr.msra.gmra.mrb[8].mxu0 %vm472_vm3, %v697_v26 }
 0x1da   : > { %1442 = vmatpush3.bf16.xpose.msra.mxu0 %v815_v27  ;;  %1443 = vmatprep.mubr.msk.bf16.mxu0 %vm1792_vm0, %v1791_v0 }
 0x1db   : > { %1453 = vmatprep.subr.bf16.mxu0 %v1791_v0 }
 0x1e1   : > { %1444 = vmatmul.mubr.msk.bf16.vlgmr.msra.gmra.mrb[12].mxu0 %vm472_vm3, %v808_v28 }
 0x1e2   : > { %1457 = vmatprep.mubr.msk.bf16.mxu0 %vm1792_vm0, %v1791_v0 }
 0x22f   : > { %v513_v29 = vpop.f32.mrb[0].mxu0 }
 0x230   : > { %v519_v30 = vmul.f32 0.35355338, %v513_v29  ;;  %v1409_v31 = vpop.f32.mrb[1].mxu0 }
 0x231   : > { %v516_v32 = vpop.f32.mrb[2].mxu0 }
 0x232   : > { %v1410_v33 = vpop.f32.mrb[3].mxu0  ;;  %v520_v34 = vsel %vm472_vm3, %v519_v30, -inf }
 0x233   : > { %521 = vmax.xlane.f32.xlu0 %v520_v34 }
 0x2a4   : > { %v629_v35 = vpop.f32.mrb[4].mxu0 }
 0x2a5   : > { %v635_v36 = vmul.f32 0.35355338, %v629_v35  ;;  %v1421_v37 = vpop.f32.mrb[5].mxu0 }
 0x2a6   : > { %v632_v38 = vpop.f32.mrb[6].mxu0 }
 0x2a7   : > { %v1422_v39 = vpop.f32.mrb[7].mxu0  ;;  %v636_v40 = vsel %vm472_vm3, %v635_v36, -inf }
 0x2a8   : > { %637 = vmax.xlane.f32.xlu1 %v636_v40  ;;  %v1586_v39 = vld [vmem:[#allocation3] sm:$0xff]  }
 0x2a9   : > { %1454 = vmatpush3.bf16.msra.mxu0 %v1586_v39 }
 0x2aa   : > { %1455 = vmatprep.subr.bf16.mxu0 %v1791_v0 }
 0x2ac   : > { %v740_v41 = vpop.f32.mrb[8].mxu0 }
 0x2ad   : > { %v746_v42 = vmul.f32 0.35355338, %v740_v41  ;;  %v1433_v43 = vpop.f32.mrb[9].mxu0 }
 0x2ae   : > { %v743_v44 = vpop.f32.mrb[10].mxu0 }
 0x2af   : > { %v1434_v45 = vpop.f32.mrb[11].mxu0  ;;  %v747_v46 = vsel %vm472_vm3, %v746_v42, -inf  ;;  %v1587_v44 = vld [vmem:[#allocation3 + $0x8] sm:$0xff]  }
 0x2b0   : > { %748 = vmax.xlane.f32.xlu0 %v747_v46  ;;  %1456 = vmatpush3.bf16.msra.mxu0 %v1587_v44 }
 0x2b1   : > { %1469 = vmatprep.subr.bf16.mxu0 %v1791_v0 }
 0x2b4   : > { %v851_v47 = vpop.f32.mrb[12].mxu0 }
 0x2b5   : > { %v857_v48 = vmul.f32 0.35355338, %v851_v47  ;;  %v1445_v49 = vpop.f32.mrb[13].mxu0 }
 0x2b6   : > { %v854_v50 = vpop.f32.mrb[14].mxu0 }
 0x2b7   : > { %v1446_v51 = vpop.f32.mrb[15].mxu0  ;;  %v858_v52 = vsel %vm472_vm3, %v857_v48, -inf }
 0x2b8   : > { %859 = vmax.xlane.f32.xlu0 %v858_v52 }
 0x2c0   : > { %v522_v53 = vpop.xlane.xlu0 %521 }
 0x2c1   : > { %v523_v54 = vsub.f32 %v519_v30, %v522_v53 }
 0x2c3   : > { %v524_v55 = vmul.f32 1.442695, %v523_v54 }
 0x2c5   : > { %1594 = vpow2.f32 %v524_v55 }
 0x2cf   : > { %v1595_v56 = vpop.eup %1594 }
 0x2d0   : > { %v526_v57 = vsel %vm472_vm3, %v1595_v56, 0.0 }
 0x2d1   : > { %527 = vadd.xlane.f32.xlu1 %v526_v57 }
 0x2e2   : > { %535 = vrot.lane.b32.xlu1 %v2023_v17, %s1796_s22  ;;  %s325_s22 = scalar_lea.vmem [#allocation9], %s1318_s9 }
 0x335   : > { %v638_v58 = vpop.xlane.xlu1 %637 }
 0x336   : > { %v639_v59 = vsub.f32 %v635_v36, %v638_v58 }
 0x338   : > { %v640_v60 = vmul.f32 1.442695, %v639_v59 }
 0x33a   : > { %1596 = vpow2.f32 %v640_v60 }
 0x33d   : > { %v749_v61 = vpop.xlane.xlu0 %748 }
 0x33e   : > { %v750_v62 = vsub.f32 %v746_v42, %v749_v61 }
 0x340   : > { %v751_v63 = vmul.f32 1.442695, %v750_v62 }
 0x342   : > { %1598 = vpow2.f32 %v751_v63 }
 0x344   : > { %v1597_v1 = vpop.eup %1596 }
 0x345   : > { %v860_v2 = vpop.xlane.xlu0 %859  ;;  %v642_v4 = vsel %vm472_vm3, %v1597_v1, 0.0 }
 0x346   : > { %v861_v5 = vsub.f32 %v857_v48, %v860_v2  ;;  %643 = vadd.xlane.f32.xlu0 %v642_v4 }
 0x348   : > { %v862_v6 = vmul.f32 1.442695, %v861_v5 }
 0x34a   : > { %1600 = vpow2.f32 %v862_v6 }
 0x34c   : > { %v1599_v7 = vpop.eup %1598 }
 0x34d   : > { %v753_v8 = vsel %vm472_vm3, %v1599_v7, 0.0 }
 0x34e   : > { %754 = vadd.xlane.f32.xlu1 %v753_v8 }
 0x354   : > { %v1601_v9 = vpop.eup %1600 }
 0x355   : > { %v864_v10 = vsel %vm472_vm3, %v1601_v9, 0.0 }
 0x356   : > { %865 = vadd.xlane.f32.xlu0 %v864_v10  ;;  %v1589_v10 = vld [vmem:[#allocation6 + $0x8] sm:$0xff]  }
 0x35e   : > { %v528_v11 = vpop.xlane.xlu1 %527 }
 0x35f   : > { %1602 = vrcp.f32 %v528_v11  ;;  %759 = vrot.lane.b32.xlu1 %v2023_v17, %s1797_s23  ;;  %v1591_v11 = vld [vmem:[%s2165_s5 + $0x8] sm:$0xff]   ;;  %s1206_s23 = sshll.u32 %s325_s22, 4  ;;  %s2114_s23 = int_to_ptr.vmem [resolvable:$true] %s1206_s23 }
 0x360   : > { %p1705_p2 = scmp.lt.s32.totalorder %s2114_s23, %s1703_s28 }
 0x362   : > { %v536_v12 = vpop.permute.xlu1 %535 }
 0x363   : > { %v542_v13 = vsel %vm540_vm4, %v536_v12, 0  ;;  %870 = vrot.lane.b32.xlu1 %v2023_v17, %s1798_s4 }
 0x364   : > { %1412 = vmatpush3.bf16.msra.mxu1 %v542_v13 }
 0x365   : > { %1423 = vmatprep.subr.bf16.mxu1 %v1791_v0 }
 0x369   : > { %v1603_v14 = vpop.eup %1602 }
 0x36a   : > { %v530_v15 = vmul.f32 %v1603_v14, %v1595_v56 }
 0x36c   : > { %648 = vrot.lane.b32.xlu0 %v2023_v17, %s1799_s15  ;;  %v531_v16 = vpack.c.bf16 %v530_v15, %v530_v15 }
 0x36e   : > { %1414 = vmatmul.mubr.msk.bf16.vlgmr.msra.gmra.mrb[8].mxu1 %vm472_vm3, %v531_v16  ;;  %v1338_v16 = vld [vmem:[#allocation8 + $0x2] ss:$0 sm:$0xff] }
 0x36f   : > { %1425 = vmatprep.mubr.msk.bf16.mxu1 %vm1792_vm0, %v1791_v0 }
 0x3d3   : > { %v644_v18 = vpop.xlane.xlu0 %643 }
 0x3d4   : > { %1604 = vrcp.f32 %v644_v18 }
 0x3db   : > { %v755_v19 = vpop.xlane.xlu1 %754 }
 0x3dc   : > { %1606 = vrcp.f32 %v755_v19  ;;  %v1339_v19 = vld [vmem:[#allocation8 + $0x3] ss:$0 sm:$0xff] }
 0x3de   : > { %v1605_v20 = vpop.eup %1604 }
 0x3df   : > { %v646_v22 = vmul.f32 %v1605_v20, %v1597_v1  ;;  %v760_v25 = vpop.permute.xlu1 %759 }
 0x3e0   : > { %v765_v27 = vsel %vm540_vm4, %v760_v25, 0  ;;  %v1340_v25 = vld [vmem:[#allocation8] ss:$0 sm:$0xff] }
 0x3e1   : > { %v647_v17 = vpack.c.bf16 %v646_v22, %v646_v22 }
 0x3e3   : > { %v866_v21 = vpop.xlane.xlu0 %865  ;;  %v871_v29 = vpop.permute.xlu1 %870 }
 0x3e4   : > { %1608 = vrcp.f32 %v866_v21  ;;  %v876_v32 = vsel %vm540_vm4, %v871_v29, 0 }
 0x3e6   : > { %v1607_v26 = vpop.eup %1606 }
 0x3e7   : > { %v649_v23 = vpop.permute.xlu0 %648  ;;  %v757_v28 = vmul.f32 %v1607_v26, %v1599_v7 }
 0x3e8   : > { %v654_v24 = vsel %vm540_vm4, %v649_v23, 0  ;;  %v1592_v23 = vld [vmem:[%s2165_s5 + $0x10] sm:$0xff]  }
 0x3e9   : > { %1424 = vmatpush3.bf16.msra.mxu1 %v654_v24  ;;  %v758_v30 = vpack.c.bf16 %v757_v28, %v757_v28  ;;  %v1593_v24 = vld [vmem:[%s2165_s5 + $0x18] sm:$0xff]  }
 0x3ea   : > { %1435 = vmatprep.subr.bf16.mxu1 %v1791_v0 }
 0x3ec   : > { %1426 = vmatmul.mubr.msk.bf16.vlgmr.msra.gmra.mrb[12].mxu1 %vm472_vm3, %v647_v17 }
 0x3ed   : > { %1436 = vmatpush3.bf16.msra.mxu1 %v765_v27  ;;  %1437 = vmatprep.mubr.msk.bf16.mxu1 %vm1792_vm0, %v1791_v0 }
 0x3ee   : > { %1447 = vmatprep.subr.bf16.mxu1 %v1791_v0  ;;  %v1609_v31 = vpop.eup %1608 }
 0x3ef   : > { %v868_v33 = vmul.f32 %v1609_v31, %v1601_v9  ;;  %v1588_v9 = vld [vmem:[#allocation6] sm:$0xff]  }
 0x3f1   : > { %v869_v34 = vpack.c.bf16 %v868_v33, %v868_v33 }
 0x3f4   : > { %1438 = vmatmul.mubr.msk.bf16.vlgmr.msra.gmra.mrb[16].mxu1 %vm472_vm3, %v758_v30 }
 0x3f5   : > { %1448 = vmatpush3.bf16.msra.mxu1 %v876_v32  ;;  %1449 = vmatprep.mubr.msk.bf16.mxu1 %vm1792_vm0, %v1791_v0  ;;  %v1344_v32 = vld [vmem:[#allocation8 + $0x1] ss:$0 sm:$0xff] }
 0x3f6   : > { %1461 = vmatprep.subr.bf16.mxu1 %v1791_v0 }
 0x3fc   : > { %1450 = vmatmul.mubr.msk.bf16.vlgmr.msra.gmra.mrb[20].mxu1 %vm472_vm3, %v869_v34 }
 0x3fd   : > { %1465 = vmatprep.mubr.msk.bf16.mxu1 %vm1792_vm0, %v1791_v0  ;;  %1462 = vmatpush3.bf16.msra.mxu1 %v1588_v9 }
 0x3fe   : > { %1463 = vmatprep.subr.bf16.mxu1 %v1791_v0 }
 0x401   : > { %1464 = vmatpush3.bf16.msra.mxu1 %v1589_v10 }
 0x441   : > { %v578_v35 = vpop.f32.mrb[8].mxu1 }
 0x442   : > { %v1415_v36 = vpop.f32.mrb[9].mxu1 }
 0x443   : > { %v581_v37 = vpop.f32.mrb[10].mxu1 }
 0x444   : > { %v1416_v38 = vpop.f32.mrb[11].mxu1 }
 0x4bf   : > { %v690_v40 = vpop.f32.mrb[12].mxu1 }
 0x4c0   : > { %919 = vrot.lane.b32.xlu0 %v690_v40, %s1800_s19  ;;  %v1427_v41 = vpop.f32.mrb[13].mxu1  ;;  %s2112_s19 = scalar_lea.hbm %s2167_s7, %s1353_s21 }
 0x4c1   : > { %v693_v42 = vpop.f32.mrb[14].mxu1 }
 0x4c2   : > { %v1428_v43 = vpop.f32.mrb[15].mxu1 }
 0x4c7   : > { %v801_v45 = vpop.f32.mrb[16].mxu1 }
 0x4c8   : > { %923 = vrot.lane.b32.xlu1 %v801_v45, %s1801_s16  ;;  %v1439_v46 = vpop.f32.mrb[17].mxu1  ;;  %s1192_s16 = scalar_lea.sflag [#allocation5], %s323_s20 }
 0x4c9   : > { %v804_v47 = vpop.f32.mrb[18].mxu1 }
 0x4ca   : > { %v1440_v48 = vpop.f32.mrb[19].mxu1 }
 0x4cb   : > { %v1350_v48 = vld [vmem:[#allocation8 + $0x4] ss:$0 sm:$0xff] }
 0x4cf   : > { %v912_v49 = vpop.f32.mrb[20].mxu1 }
 0x4d0   : > { %927 = vrot.lane.b32.xlu0 %v912_v49, %s1802_s12  ;;  %v1451_v50 = vpop.f32.mrb[21].mxu1  ;;  %s1698_s12 = scalar_lea.vmem %s2114_s23, 128 }
 0x4d1   : > { %v915_v51 = vpop.f32.mrb[22].mxu1  ;;  %v1351_v50 = vld [vmem:[#allocation8 + $0x5] ss:$0 sm:$0xff]  ;;  %p1699_p13 = scmp.ne.s32.totalorder %s2114_s23, %s1698_s12  ;;  %p1706_p3 = scmp.lt.s32.totalorder %s1704_s14, %s1698_s12 }
 0x4d2   : > { %v1452_v52 = vpop.f32.mrb[23].mxu1 }
 0x4d3   : > { %p1700_p11 = pnand %p1699_p13, %p2189_p10  ;;  %p1707_p5 = por %p1706_p3, %p1705_p2 }
 0x4d5   : > { %p1701_p0 = pneg %p1700_p11 }
 0x4d7   : > { %p1708_p6 = pnand %p1707_p5, %p1701_p0 }
 0x532   : > { %v920_v53 = vpop.permute.xlu0 %919 }
 0x533   : > { %v930_v55 = vsel %vm472_vm3, %v578_v35, %v920_v53 }
 0x53a   : > { %v924_v54 = vpop.permute.xlu1 %923 }
 0x53b   : > { %v932_v56 = vsel %vm931_vm5, %v930_v55, %v924_v54 }
 0x542   : > { %v928_v57 = vpop.permute.xlu0 %927 }
 0x543   : > { %v934_v58 = vsel %vm933_vm6, %v932_v56, %v928_v57 }
 0x544   : > { %v935_v59 = vpack.c.bf16 %v934_v58, %v934_v58 }
 0x546   : > { %1458 = vmatmul.mubr.msk.bf16.vlgmr.msra.gmra.mrb[16].mxu0 %vm353_vm1, %v935_v59 }
 0x547   : > { %1477 = vmatprep.mubr.msk.bf16.mxu0 %vm1792_vm0, %v1791_v0 }
 0x619   : > { %v989_v60 = vpop.f32.mrb[16].mxu0 }
 0x61a   : > { %v995_v61 = vadd.f32 %v989_v60, %v2002_v3  ;;  %v1459_v62 = vpop.f32.mrb[17].mxu0  ;;  %v1590_v3 = vld [vmem:[%s2165_s5] sm:$0xff]  }
 0x61b   : > { %v992_v63 = vpop.f32.mrb[18].mxu0  ;;  %1470 = vmatpush3.bf16.msra.mxu0 %v1590_v3 }
 0x61c   : > { %v1460_v1 = vpop.f32.mrb[19].mxu0  ;;  %v996_v2 = vsel %vm353_vm1, %v995_v61, 0.0  ;;  %1471 = vmatprep.subr.bf16.mxu0 %v1791_v0 }
 0x61d   : > { %997 = vadd.xlane.f32.xlu1 %v996_v2 }
 0x61f   : > { %1472 = vmatpush3.bf16.msra.mxu0 %v1591_v11 }
 0x620   : > { %1473 = vmatprep.subr.bf16.mxu0 %v1791_v0 }
 0x623   : > { %1474 = vmatpush3.bf16.msra.mxu0 %v1592_v23 }
 0x624   : > { %1475 = vmatprep.subr.bf16.mxu0 %v1791_v0 }
 0x627   : > { %1476 = vmatpush3.bf16.msra.mxu0 %v1593_v24 }
 0x6aa   : > { %v998_v4 = vpop.xlane.xlu1 %997 }
 0x6ab   : > { %v1000_v5 = vmul.f32 0.03125, %v998_v4 }
 0x6ad   : > { %v1001_v6 = vsub.f32 %v995_v61, %v1000_v5 }
 0x6af   : > { %v1002_v7 = vmul.f32 %v1001_v6, %v1001_v6 }
 0x6b1   : > { %v1003_v8 = vsel %vm353_vm1, %v1002_v7, 0.0 }
 0x6b2   : > { %1004 = vadd.xlane.f32.xlu0 %v1003_v8 }
 0x73f   : > { %v1005_v12 = vpop.xlane.xlu0 %1004 }
 0x740   : > { %v1006_v13 = vmul.f32 0.03125, %v1005_v12 }
 0x742   : > { %v1007_v14 = vadd.f32 1e-05, %v1006_v13 }
 0x744   : > { %1610 = vrsqrt.f32 %v1007_v14 }
 0x74e   : > { %v1611_v15 = vpop.eup %1610 }
 0x74f   : > { %v1009_v18 = vmul.f32 %v1611_v15, %v1001_v6 }
 0x751   : > { %v1014_v20 = vmul.f32 %v1338_v16, %v1009_v18 }
 0x753   : > { %v1019_v21 = vadd.f32 %v1339_v19, %v1014_v20 }
 0x755   : > { %v1020_v22 = vpack.c.bf16 %v1019_v21, %v1019_v21 }
 0x757   : > { %1466 = vmatmul.mubr.msk.bf16.vlgmr.msra.gmra.mrb[24].mxu1 %vm353_vm1, %v1020_v22 }
 0x82a   : > { %v1078_v17 = vpop.f32.mrb[24].mxu1 }
 0x82b   : > { %v1079_v26 = vadd.f32 %v1340_v25, %v1078_v17  ;;  %v1467_v27 = vpop.f32.mrb[25].mxu1 }
 0x82c   : > { %v1081_v28 = vpop.f32.mrb[26].mxu1 }
 0x82d   : > { %v1084_v29 = vmax.f32 %v1079_v26, 0.0  ;;  %v1468_v30 = vpop.f32.mrb[27].mxu1 }
 0x82f   : > { %v1085_v31 = vpack.c.bf16 %v1084_v29, %v1084_v29 }
 0x831   : > { %1478 = vmatmul.mubr.msk.bf16.vlgmr.msra.gmra.mrb[20].mxu0 %vm1122_vm7, %v1085_v31 }
 0x904   : > { %v1160_v33 = vpop.f32.mrb[20].mxu0 }
 0x905   : > { %v1161_v34 = vadd.f32 %v1344_v32, %v1160_v33  ;;  %v1479_v35 = vpop.f32.mrb[21].mxu0 }
 0x906   : > { %v1163_v0 = vpop.f32.mrb[22].mxu0 }
 0x907   : > { %v1480_v36 = vpop.f32.mrb[23].mxu0  ;;  %v1166_v37 = vadd.f32 %v1161_v34, %v1019_v21 }
 0x909   : > { %v1167_v38 = vsel %vm353_vm1, %v1166_v37, 0.0 }
 0x90a   : > { %1168 = vadd.xlane.f32.xlu0 %v1167_v38 }
 0x997   : > { %v1169_v39 = vpop.xlane.xlu0 %1168 }
 0x998   : > { %v1170_v40 = vmul.f32 0.03125, %v1169_v39 }
 0x99a   : > { %v1171_v41 = vsub.f32 %v1166_v37, %v1170_v40 }
 0x99c   : > { %v1172_v42 = vmul.f32 %v1171_v41, %v1171_v41 }
 0x99e   : > { %v1173_v43 = vsel %vm353_vm1, %v1172_v42, 0.0 }
 0x99f   : > { %1174 = vadd.xlane.f32.xlu1 %v1173_v43 }
 0xa2c   : > { %v1175_v44 = vpop.xlane.xlu1 %1174 }
 0xa2d   : > { %v1176_v45 = vmul.f32 0.03125, %v1175_v44 }
 0xa2f   : > { %v1177_v46 = vadd.f32 1e-05, %v1176_v45 }
 0xa31   : > { %1612 = vrsqrt.f32 %v1177_v46 }
 0xa3b   : > { %v1613_v47 = vpop.eup %1612 }
 0xa3c   : > { %v1179_v49 = vmul.f32 %v1613_v47, %v1171_v41 }
 0xa3e   : > { %v1184_v51 = vmul.f32 %v1350_v48, %v1179_v49 }
 0xa40   : > { %v1189_v52 = vadd.f32 %v1351_v50, %v1184_v51 }
 0xa42   : > { %1190 = vst.msk [vmem:[%s325_s22] sm:$0xff] %vm353_vm1, %v1189_v52 }
 0xa43   : > { %1711 = shalt.err (!%p1708_p6)
}
 0xa44   : > { %s1712_s26 = scalar_lea.hbm %s2112_s19, 128  ;;  %s1716_s8 = scalar_lea.hbm %s2167_s7, 256 }
 0xa45   : > { %p1713_p7 = scmp.ne.s32.totalorder %s2112_s19, %s1712_s26  ;;  %p1717_p4 = scmp.lt.u32.totalorder %s2112_s19, %s2167_s7 }
 0xa46   : > { %p1718_p8 = scmp.lt.u32.totalorder %s1716_s8, %s1712_s26  ;;  %p1720_p13 = scmp.lt.u32.totalorder %s1712_s26, %s2112_s19 }
 0xa47   : > { %p1714_p9 = pnand %p1713_p7, %p2189_p10 }
 0xa48   : > { %p1719_p1 = por %p1718_p8, %p1717_p4 }
 0xa49   : > { %p1715_p12 = pneg %p1714_p9 }
 0xa4a   : > { %p1721_p11 = por %p1720_p13, %p1719_p1 }
 0xa4c   : > { %p1722_p0 = pnand %p1721_p11, %p1715_p12 }
 0xa4e   : > { %1725 = shalt.err (!%p1722_p0)
}
 0xa4f   : > { %1493 = dma.vmem_to_hbm [thread:$0]  (%p2189_p10), %s2114_s23, 128, %s2112_s19, %s1192_s16  }
 0xa50 PF: > { %p1515_p2 = scmp.ge.s32.totalorder %s1784_s29, 2  ;;  %s1218_s20 = sand.u32 1, %s1764_s24  }
 0xa51   : > { %p2190_p3 = scmp.ne.s32.totalorder %s2180_s13, 0  ;;  %s1219_s9 = scalar_lea.sflag [#allocation5], %s1218_s20 }
 0xa53   : > { %p1506_p5 = pnand %p1515_p2, %p2190_p3 }
 0xa55   : > { %1759 = dma.done.wait (!%p1506_p5), %s1219_s9, 128  }
 0xa56   : > { %1761 = vsyncadd (!%p1506_p5), %s1219_s9, 4294967168  ;;  %s22_s29 = sadd.s32 1, %s1784_s29   ;;  %s2191_s21 = sld [smem:[#allocation13_spill]] }
 0xa57   : > { %p19_p6 = scmp.ge.s32.totalorder %s22_s29, 4   ;;  %s2192_s26 = sld [smem:[#allocation16_spill]] }
 0xa58   : > { %s2193_s27 = sld [smem:[#allocation14_spill]]  ;;  %s2194_s28 = sld [smem:[#allocation15_spill]] }
 0xa59   : > { %s2195_s24 = smov %s1768_s25  ;;  %21 = sbr.rel (!%p19_p6) target bundleno = 8 (0x8), region = 101 }
 0xa5c   : > { %s2196_s25 = smov %s2191_s21 }
 0xa60   :  { %1224 = vsyncpa [#allocation4], 1 }
 0xa61   :  { %1226 = vsyncpa [#allocation4 + $0x1], 1 }
 0xa62   :  { %1227 = vsyncpa [#allocation7], 1 }
 0xa63   :  { %1228 = vsyncpa [#allocation5], 1 }
 0xa64   :  { %1230 = vsyncpa [#allocation5 + $0x1], 1 }

</bundles_post_ra>
